<compile_context>
chip_gen: v6e
topology: v6e:2x2x1
jax: 0.10.0
libtpu: 0.0.40
codegen_flags: <defaults>
</compile_context>

<pallas_src>
import functools

import jax
import jax.numpy as jnp
from jax.experimental import pallas as pl
from jax.experimental.pallas import tpu as pltpu


# ----------------------------- architecture helpers -----------------------------

def _arch_layer_dims(input_dimension, arch_info):
    """Mirror SingleLPNetCustom.__init__: returns [(in_features, out_features), ...]."""
    nr_layers, nr_neurons, neuron_dev = arch_info.split('-')
    nr_layers = int(nr_layers)
    nr_neurons = int(nr_neurons)
    dims = []
    prev_neurons = input_dimension
    next_neurons = nr_neurons
    for layer in range(nr_layers):
        dims.append((prev_neurons, next_neurons))
        prev_neurons = next_neurons
        if layer == nr_layers - 2:
            next_neurons = 1
        elif neuron_dev == 'dec':
            next_neurons = int(0.5 * next_neurons)
            if next_neurons < 1:
                next_neurons = 1
    return dims


def init_params(key, input_dimension, arch_info):
    """PyTorch-Linear-style init: U(-1/sqrt(fan_in), 1/sqrt(fan_in)); weights stored as W^T."""
    dims = _arch_layer_dims(input_dimension, arch_info)
    params = []
    for fan_in, fan_out in dims:
        key, kw, kb = jax.random.split(key, 3)
        bound = 1.0 / (fan_in ** 0.5)
        w = jax.random.uniform(kw, (fan_in, fan_out), jnp.float32, -bound, bound)
        b = jax.random.uniform(kb, (1, fan_out), jnp.float32, -bound, bound)
        params.append((w, b))
    return params


# ------------------------------ chip-model helpers -------------------------------

def _device_kind():
    try:
        return jax.devices()[0].device_kind.lower()
    except Exception:
        return ""


def _num_tensorcores_per_chip(kind):
    # v7x exposes 2 TensorCores per chip (fed via the "parallel" batch grid axis);
    # v5e/v6e are single-TC.  TODO(synk): extend detection for v4/v5p megacore.
    return 2 if ("v7" in kind or "7x" in kind) else 1


def _vmem_capacity_bytes(kind):
    try:
        return int(pltpu.get_tpu_info().vmem_capacity_bytes)
    except Exception:
        return 64 * 1024 * 1024 if ("v7" in kind or "7x" in kind) else 128 * 1024 * 1024


def _scoped_vmem_default_bytes(kind):
    # Scoped-VMEM compiler default: ~16 MiB on v5e, ~32 MiB on v6e/v7x.
    return 16 * 1024 * 1024 if "v5" in kind else 32 * 1024 * 1024


def _round_up(a, m):
    return ((a + m - 1) // m) * m


def _ceil_div(a, b):
    return -(-a // b)


def _choose_block_m(batch, requested, num_tc):
    """Batch tile: biggest that makes sense for the chip's TensorCore count."""
    requested = max(16, _round_up(int(requested), 16))
    batch16 = _round_up(max(int(batch), 1), 16)     # bf16 x tile -> sublane multiple of 16
    if num_tc <= 1:
        # v5e/v6e: a single TensorCore; extra grid steps only add ~0.35us/step overhead.
        return min(requested, batch16)
    # v7x: keep >=2 grid steps and prefer an even step count so both TCs get equal work.
    bm = min(requested, max(16, _round_up(_ceil_div(batch16, 2), 16)))
    steps = _ceil_div(batch16, bm)
    if steps > 1 and steps % 2 == 1:
        bm = max(16, _round_up(_ceil_div(batch16, steps + 1), 16))
    return bm


# --------------------------------- the kernel -----------------------------------

def _mlp_kernel(num_layers, apply_sigmoid, lane_dense_out, *refs):
    """Fused MLP: all Linear + ReLU (+ optional sigmoid) layers on the current batch tile."""
    x_ref = refs[0]
    o_ref = refs[-1]
    wb = refs[1:-1]                      # (w0, b0, w1, b1, ...)

    h = x_ref[...]                       # bf16 tile straight off the DMA (no f32 round-trip)
    for i in range(num_layers):
        w = wb[2 * i][...]
        b = wb[2 * i + 1][...]           # f32 (1, out_features)
        is_last = (i == num_layers - 1)
        if is_last and lane_dense_out:
            # Final out_features == 1: contract the feature axis of BOTH operands
            # (the q @ k.T pattern): w_row(1,K) . h(bm,K)^T -> (1, bm).  The result is
            # already lane-dense, so the store avoids masked 1-lane (bm, 1) writes.
            # f32 operands keep the last layer numerically close to the f32 reference.
            h = jax.lax.dot_general(
                w.astype(jnp.float32), h.astype(jnp.float32),
                dimension_numbers=(((1,), (1,)), ((), ())),
                preferred_element_type=jnp.float32) + b       # (1, bm) + (1, 1)
        else:
            # Hidden layers: bf16 MXU operands, f32 accumulation.  Bias/ReLU stay in f32
            # (v5e VPU has no bf16; on v6e/v7x the VALU is not the bottleneck here).
            h = jnp.dot(h.astype(w.dtype), w,
                        preferred_element_type=jnp.float32) + b
        if not is_last:
            h = jnp.maximum(h, 0.0)      # ReLU (Dropout is identity in eval mode)
    if apply_sigmoid:
        h = jax.nn.sigmoid(h)
    o_ref[...] = h.astype(o_ref.dtype)


# --------------------------------- the wrapper -----------------------------------

def _vmem_estimate(block_m, x_itemsize, in_dim, out_tile_elems, flat_args):
    est = 2 * block_m * in_dim * x_itemsize      # double-buffered x tile
    est += 2 * out_tile_elems * 4                # double-buffered output tile
    widths = [in_dim]
    for a in flat_args:
        est += 2 * a.size * a.dtype.itemsize     # resident (buffered) weights / biases
        widths.append(a.shape[-1])
    est += 3 * block_m * max(widths) * 4         # live f32 activation slabs at widest layer
    return est


def single_lp_net_custom_forward(x, params, predict=False, block_m=1024,
                                 mxu_dtype=jnp.bfloat16):
    B, D = x.shape
    num_layers = len(params)
    out_dim = params[-1][0].shape[1]
    lane_dense_out = (out_dim == 1)

    kind = _device_kind()
    num_tc = _num_tensorcores_per_chip(kind)
    bm = _choose_block_m(B, block_m, num_tc)
    nt = _ceil_div(B, bm)

    # Stream the batch in the MXU dtype: halves the dominant per-step input DMA and the
    # x-tile VMEM footprint.  Numerics are unchanged (x was cast at the first dot anyway);
    # under jit this convert fuses with whatever produced x upstream.
    x_in = x.astype(mxu_dtype)

    # Batch is tiled over the grid (ragged edge handled by Pallas OOB masking — no pad);
    # every weight / bias is a full-array resident block (constant index_map).
    in_specs = [pl.BlockSpec((bm, D), lambda i: (i, 0))]
    flat_wb = []
    for li, (w, b) in enumerate(params):
        if li == num_layers - 1 and lane_dense_out:
            # (K, 1) final weight passed as a (1, K) f32 row for the transposed
            # contraction that emits the lane-dense (1, bm) output row.
            w_arg = w.reshape(1, w.shape[0]).astype(jnp.float32)
        else:
            w_arg = w.astype(mxu_dtype)
        b_arg = b.astype(jnp.float32)
        in_specs.append(pl.BlockSpec(w_arg.shape, lambda i: (0, 0)))
        in_specs.append(pl.BlockSpec(b_arg.shape, lambda i: (0, 0)))
        flat_wb.extend([w_arg, b_arg])

    if lane_dense_out:
        # Lane-dense output slab: (num_tiles, 1, bm), reshaped to (B, 1) afterwards.
        out_shape = jax.ShapeDtypeStruct((nt, 1, bm), jnp.float32)
        out_specs = pl.BlockSpec((None, 1, bm), lambda i: (i, 0, 0))
        out_tile_elems = bm
    else:
        # Rare nr_layers==1 configs where the last Linear is wide; edge writes masked.
        out_shape = jax.ShapeDtypeStruct((B, out_dim), jnp.float32)
        out_specs = pl.BlockSpec((bm, out_dim), lambda i: (i, 0))
        out_tile_elems = bm * out_dim

    compiler_kwargs = {"dimension_semantics": ("parallel",)}
    est = _vmem_estimate(bm, jnp.dtype(mxu_dtype).itemsize, D, out_tile_elems, flat_wb)
    scoped_default = _scoped_vmem_default_bytes(kind)
    if est > scoped_default:
        # Only override the scoped-VMEM default when large tiles actually need it,
        # capped relative to the chip's physical VMEM (64 MiB on v7x, 128 MiB v5e/v6e).
        cap = _vmem_capacity_bytes(kind)
        limit = min(int(0.60 * cap), 2 * est)
        compiler_kwargs["vmem_limit_bytes"] = int(max(limit, est + (1 << 20)))

    kernel = functools.partial(_mlp_kernel, num_layers, bool(predict), lane_dense_out)

    out = pl.pallas_call(
        kernel,
        out_shape=out_shape,
        grid_spec=pltpu.PrefetchScalarGridSpec(
            num_scalar_prefetch=0,
            grid=(nt,),
            in_specs=in_specs,
            out_specs=out_specs,
        ),
        compiler_params=pltpu.CompilerParams(**compiler_kwargs),
    )(x_in, *flat_wb)

    if lane_dense_out:
        out = out.reshape(nt * bm, 1)
        if nt * bm != B:
            out = out[:B]
    return out


# ------------------------------ pure-JAX reference -------------------------------

def reference_forward(x, params, predict=False, mxu_dtype=jnp.bfloat16):
    """Mirrors the kernel arithmetic: bf16 hidden matmul operands, f32 accumulation,
    f32 final (out_features==1) layer."""
    h = x.astype(jnp.float32)
    n = len(params)
    for i, (w, b) in enumerate(params):
        is_last = (i == n - 1)
        if is_last and w.shape[1] == 1:
            h = jnp.dot(h, w.astype(jnp.float32),
                        preferred_element_type=jnp.float32) + b
        else:
            h = jnp.dot(h.astype(mxu_dtype), w.astype(mxu_dtype),
                        preferred_element_type=jnp.float32) + b
        if not is_last:
            h = jnp.maximum(h, 0.0)
    if predict:
        h = jax.nn.sigmoid(h)
    return h


# ------------------------------------ demo ---------------------------------------

if __name__ == "__main__":
    key = jax.random.PRNGKey(0)
    key, kx, kp = jax.random.split(key, 3)

    input_dimension = 32
    arch_info = "4-128-const"          # 4 Linear layers: 32 -> 128 -> 128 -> 128 -> 1
    batch = 256

    x = jax.random.normal(kx, (batch, input_dimension), jnp.float32)
    params = init_params(kp, input_dimension, arch_info)

    out_logits = jax.block_until_ready(
        single_lp_net_custom_forward(x, params, predict=False))
    out_probs = jax.block_until_ready(
        single_lp_net_custom_forward(x, params, predict=True))

    ref_logits = reference_forward(x, params, predict=False)
    ref_probs = reference_forward(x, params, predict=True)

    assert out_logits.shape == (batch, 1)
    assert out_probs.shape == (batch, 1)
    assert jnp.allclose(out_logits, ref_logits, atol=3e-3, rtol=3e-3)
    assert jnp.allclose(out_probs, ref_probs, atol=3e-3, rtol=3e-3)

    # Ragged batch + 'dec' architecture + forced multi-step grid: exercises the cdiv
    # edge block (no jnp.pad) and the lane-dense output reshape across several tiles.
    key, kx2, kp2 = jax.random.split(key, 3)
    x2 = jax.random.normal(kx2, (100, 16), jnp.float32)
    params2 = init_params(kp2, 16, "3-64-dec")      # 16 -> 64 -> 32 -> 1
    out2 = jax.block_until_ready(
        single_lp_net_custom_forward(x2, params2, predict=True, block_m=64))
    ref2 = reference_forward(x2, params2, predict=True)
    assert out2.shape == (100, 1)
    assert jnp.allclose(out2, ref2, atol=3e-3, rtol=3e-3)

    print("KERNEL_OK")
</pallas_src>

<mosaic_0001>
module attributes {stable_mosaic.version = 11 : i64} {
  func.func @_mlp_kernel(%arg0: i32, %arg1: memref<256x32xbf16, #tpu.memory_space<vmem>>, %arg2: memref<32x128xbf16, #tpu.memory_space<vmem>>, %arg3: memref<1x128xf32, #tpu.memory_space<vmem>>, %arg4: memref<128x128xbf16, #tpu.memory_space<vmem>>, %arg5: memref<1x128xf32, #tpu.memory_space<vmem>>, %arg6: memref<128x128xbf16, #tpu.memory_space<vmem>>, %arg7: memref<1x128xf32, #tpu.memory_space<vmem>>, %arg8: memref<1x128xf32, #tpu.memory_space<vmem>>, %arg9: memref<1x1xf32, #tpu.memory_space<vmem>>, %arg10: memref<1x1x256xf32, #tpu.memory_space<vmem>>) attributes {dimension_semantics = [#tpu.dimension_semantics<parallel>], iteration_bounds = array<i64: 1>, scalar_prefetch = 0 : i64, scratch_operands = 0 : i64, tpu.core_type = #tpu.core_type<tc>, window_params = [{transform_indices = @transform_0, window_bounds = array<i64: 256, 32>}, {pipeline_mode = #tpu.pipeline_mode<synchronous>, transform_indices = @transform_1, window_bounds = array<i64: 32, 128>}, {pipeline_mode = #tpu.pipeline_mode<synchronous>, transform_indices = @transform_2, window_bounds = array<i64: 1, 128>}, {pipeline_mode = #tpu.pipeline_mode<synchronous>, transform_indices = @transform_3, window_bounds = array<i64: 128, 128>}, {pipeline_mode = #tpu.pipeline_mode<synchronous>, transform_indices = @transform_4, window_bounds = array<i64: 1, 128>}, {pipeline_mode = #tpu.pipeline_mode<synchronous>, transform_indices = @transform_5, window_bounds = array<i64: 128, 128>}, {pipeline_mode = #tpu.pipeline_mode<synchronous>, transform_indices = @transform_6, window_bounds = array<i64: 1, 128>}, {pipeline_mode = #tpu.pipeline_mode<synchronous>, transform_indices = @transform_7, window_bounds = array<i64: 1, 128>}, {pipeline_mode = #tpu.pipeline_mode<synchronous>, transform_indices = @transform_8, window_bounds = array<i64: 1, 1>}, {transform_indices = @transform_9, window_bounds = array<i64: 1, 1, 256>}]} {
    %c0 = arith.constant 0 : index
    %c0_0 = arith.constant 0 : index
    %0 = vector.load %arg1[%c0, %c0_0] : memref<256x32xbf16, #tpu.memory_space<vmem>>, vector<256x32xbf16>
    %c0_1 = arith.constant 0 : index
    %c0_2 = arith.constant 0 : index
    %1 = vector.load %arg2[%c0_1, %c0_2] : memref<32x128xbf16, #tpu.memory_space<vmem>>, vector<32x128xbf16>
    %c0_3 = arith.constant 0 : index
    %c0_4 = arith.constant 0 : index
    %2 = vector.load %arg3[%c0_3, %c0_4] : memref<1x128xf32, #tpu.memory_space<vmem>>, vector<1x128xf32>
    %cst = arith.constant dense<0.000000e+00> : vector<256x128xf32>
    %3 = tpu.matmul %0, %1, %cst {dimension_numbers = #tpu.dot_dimension_numbers<[1], [0], [0], [1], [0, 0, 1, 1], [], []>} : vector<256x32xbf16>, vector<32x128xbf16>, vector<256x128xf32> -> vector<256x128xf32>
    %4 = vector.broadcast %2 : vector<1x128xf32> to vector<256x128xf32>
    %5 = arith.addf %3, %4 : vector<256x128xf32>
    %cst_5 = arith.constant 0.000000e+00 : f32
    %6 = vector.broadcast %cst_5 : f32 to vector<256x128xf32>
    %7 = arith.maximumf %5, %6 : vector<256x128xf32>
    %c0_6 = arith.constant 0 : index
    %c0_7 = arith.constant 0 : index
    %8 = vector.load %arg4[%c0_6, %c0_7] : memref<128x128xbf16, #tpu.memory_space<vmem>>, vector<128x128xbf16>
    %c0_8 = arith.constant 0 : index
    %c0_9 = arith.constant 0 : index
    %9 = vector.load %arg5[%c0_8, %c0_9] : memref<1x128xf32, #tpu.memory_space<vmem>>, vector<1x128xf32>
    %10 = arith.truncf %7 : vector<256x128xf32> to vector<256x128xbf16>
    %cst_10 = arith.constant dense<0.000000e+00> : vector<256x128xf32>
    %11 = tpu.matmul %10, %8, %cst_10 {dimension_numbers = #tpu.dot_dimension_numbers<[1], [0], [0], [1], [0, 0, 1, 1], [], []>} : vector<256x128xbf16>, vector<128x128xbf16>, vector<256x128xf32> -> vector<256x128xf32>
    %12 = vector.broadcast %9 : vector<1x128xf32> to vector<256x128xf32>
    %13 = arith.addf %11, %12 : vector<256x128xf32>
    %cst_11 = arith.constant 0.000000e+00 : f32
    %14 = vector.broadcast %cst_11 : f32 to vector<256x128xf32>
    %15 = arith.maximumf %13, %14 : vector<256x128xf32>
    %c0_12 = arith.constant 0 : index
    %c0_13 = arith.constant 0 : index
    %16 = vector.load %arg6[%c0_12, %c0_13] : memref<128x128xbf16, #tpu.memory_space<vmem>>, vector<128x128xbf16>
    %c0_14 = arith.constant 0 : index
    %c0_15 = arith.constant 0 : index
    %17 = vector.load %arg7[%c0_14, %c0_15] : memref<1x128xf32, #tpu.memory_space<vmem>>, vector<1x128xf32>
    %18 = arith.truncf %15 : vector<256x128xf32> to vector<256x128xbf16>
    %cst_16 = arith.constant dense<0.000000e+00> : vector<256x128xf32>
    %19 = tpu.matmul %18, %16, %cst_16 {dimension_numbers = #tpu.dot_dimension_numbers<[1], [0], [0], [1], [0, 0, 1, 1], [], []>} : vector<256x128xbf16>, vector<128x128xbf16>, vector<256x128xf32> -> vector<256x128xf32>
    %20 = vector.broadcast %17 : vector<1x128xf32> to vector<256x128xf32>
    %21 = arith.addf %19, %20 : vector<256x128xf32>
    %cst_17 = arith.constant 0.000000e+00 : f32
    %22 = vector.broadcast %cst_17 : f32 to vector<256x128xf32>
    %23 = arith.maximumf %21, %22 : vector<256x128xf32>
    %c0_18 = arith.constant 0 : index
    %c0_19 = arith.constant 0 : index
    %24 = vector.load %arg8[%c0_18, %c0_19] : memref<1x128xf32, #tpu.memory_space<vmem>>, vector<1x128xf32>
    %c0_20 = arith.constant 0 : index
    %c0_21 = arith.constant 0 : index
    %25 = vector.load %arg9[%c0_20, %c0_21] : memref<1x1xf32, #tpu.memory_space<vmem>>, vector<1x1xf32>
    %cst_22 = arith.constant dense<0.000000e+00> : vector<1x256xf32>
    %26 = tpu.matmul %24, %23, %cst_22 {dimension_numbers = #tpu.dot_dimension_numbers<[1], [1], [0], [0], [0, 0, 1, 0], [], []>} : vector<1x128xf32>, vector<256x128xf32>, vector<1x256xf32> -> vector<1x256xf32>
    %27 = vector.broadcast %25 : vector<1x1xf32> to vector<1x256xf32>
    %28 = arith.addf %26, %27 : vector<1x256xf32>
    %c0_23 = arith.constant 0 : index
    %c0_24 = arith.constant 0 : index
    %c0_25 = arith.constant 0 : index
    %29 = vector.load %arg10[%c0_23, %c0_24, %c0_25] : memref<1x1x256xf32, #tpu.memory_space<vmem>>, vector<1x1x256xf32>
    %30 = vector.shape_cast %29 : vector<1x1x256xf32> to vector<1x256xf32>
    %31 = vector.shape_cast %28 : vector<1x256xf32> to vector<1x1x256xf32>
    tpu.vector_store %arg10[%c0_23, %c0_24, %c0_25], %31 {strides = array<i32>} : memref<1x1x256xf32, #tpu.memory_space<vmem>>, vector<1x1x256xf32>,
    return
  }
  func.func @transform_0(%arg0: i32) -> (i32, i32) {
    %c0_i32 = arith.constant 0 : i32
    %c0_i32_0 = arith.constant 0 : i32
    return %arg0, %c0_i32 : i32, i32
  }
  func.func @transform_1(%arg0: i32) -> (i32, i32) {
    %c0_i32 = arith.constant 0 : i32
    %c0_i32_0 = arith.constant 0 : i32
    %c0_i32_1 = arith.constant 0 : i32
    return %c0_i32, %c0_i32_0 : i32, i32
  }
  func.func @transform_2(%arg0: i32) -> (i32, i32) {
    %c0_i32 = arith.constant 0 : i32
    %c0_i32_0 = arith.constant 0 : i32
    %c0_i32_1 = arith.constant 0 : i32
    return %c0_i32, %c0_i32_0 : i32, i32
  }
  func.func @transform_3(%arg0: i32) -> (i32, i32) {
    %c0_i32 = arith.constant 0 : i32
    %c0_i32_0 = arith.constant 0 : i32
    %c0_i32_1 = arith.constant 0 : i32
    return %c0_i32, %c0_i32_0 : i32, i32
  }
  func.func @transform_4(%arg0: i32) -> (i32, i32) {
    %c0_i32 = arith.constant 0 : i32
    %c0_i32_0 = arith.constant 0 : i32
    %c0_i32_1 = arith.constant 0 : i32
    return %c0_i32, %c0_i32_0 : i32, i32
  }
  func.func @transform_5(%arg0: i32) -> (i32, i32) {
    %c0_i32 = arith.constant 0 : i32
    %c0_i32_0 = arith.constant 0 : i32
    %c0_i32_1 = arith.constant 0 : i32
    return %c0_i32, %c0_i32_0 : i32, i32
  }
  func.func @transform_6(%arg0: i32) -> (i32, i32) {
    %c0_i32 = arith.constant 0 : i32
    %c0_i32_0 = arith.constant 0 : i32
    %c0_i32_1 = arith.constant 0 : i32
    return %c0_i32, %c0_i32_0 : i32, i32
  }
  func.func @transform_7(%arg0: i32) -> (i32, i32) {
    %c0_i32 = arith.constant 0 : i32
    %c0_i32_0 = arith.constant 0 : i32
    %c0_i32_1 = arith.constant 0 : i32
    return %c0_i32, %c0_i32_0 : i32, i32
  }
  func.func @transform_8(%arg0: i32) -> (i32, i32) {
    %c0_i32 = arith.constant 0 : i32
    %c0_i32_0 = arith.constant 0 : i32
    %c0_i32_1 = arith.constant 0 : i32
    return %c0_i32, %c0_i32_0 : i32, i32
  }
  func.func @transform_9(%arg0: i32) -> (i32, i32, i32) {
    %c0_i32 = arith.constant 0 : i32
    %c0_i32_0 = arith.constant 0 : i32
    %c0_i32_1 = arith.constant 0 : i32
    return %arg0, %c0_i32, %c0_i32_0 : i32, i32, i32
  }
}

</mosaic_0001>

<bundles_post_ra>
// kernel: tpu_custom_call.1
= control target key start
LH: loop header
LB: loop body
LE: loop exit
PB: predicated region body
PF: predicated region fallthrough
CT: control target
= control target key end

     0   :  { %s1796_s0 = inlined_call_operand.vmem [shape: bf16[256,32], index: 0, kind: input, shape index: {}]   ;;  %s1797_s1 = inlined_call_operand.vmem [shape: bf16[32,128], index: 1, kind: input, shape index: {}]   ;;  %s1798_s2 = inlined_call_operand.vmem [shape: f32[1,128], index: 2, kind: input, shape index: {}]   ;;  %s1799_s3 = inlined_call_operand.vmem [shape: bf16[128,128], index: 3, kind: input, shape index: {}]   ;;  %s1800_s4 = inlined_call_operand.vmem [shape: f32[1,128], index: 4, kind: input, shape index: {}]   ;;  %s1801_s5 = inlined_call_operand.vmem [shape: bf16[128,128], index: 5, kind: input, shape index: {}]   ;;  %s1802_s6 = inlined_call_operand.vmem [shape: f32[1,128], index: 6, kind: input, shape index: {}]   ;;  %s1803_s7 = inlined_call_operand.vmem [shape: f32[1,128], index: 7, kind: input, shape index: {}]   ;;  %s1804_s8 = inlined_call_operand.<no memory space> [shape: f32[1,1], index: 8, kind: input, shape index: {}]   ;;  %s1805_s9 = inlined_call_operand.hbm [shape: f32[1,1,256], index: 9, kind: output, shape index: {}]  }
   0x1   :  { %v14_v0 = vstv %s1804_s8 }
   0x2   :  { %15 = vst [vmem:[#allocation2] sm:$0x1] %v14_v0 }
   0x3   :  { %v1385_v1 = vld [vmem:[%s1797_s1 + $0x8] sm:$0xff]   ;;  %v1386_v2 = vld [vmem:[%s1797_s1] sm:$0xff]   ;;  %vm171_vm0 = vcmask 261120   ;;  %v1389_v5 = vld [vmem:[%s1796_s0 + $0x10] sm:$0xff]  }
   0x4   :  { %1245 = vmatprep.subr.bf16.mxu0 %v1385_v1  ;;  %v1387_v3 = vld [vmem:[%s1796_s0] sm:$0xff]   ;;  %1377 = vmatprep.subr.bf16.mxu1 %v1385_v1  ;;  %v1388_v4 = vld [vmem:[%s1796_s0 + $0x8] sm:$0xff]   ;;  %v1397_v8 = vld [vmem:[%s1796_s0 + $0x50] sm:$0xff]  }
   0x5   :  { %1246 = vmatpush3.bf16.msra.mxu0 %v1385_v1  ;;  %1379 = vmatpush3.bf16.msra.mxu1 %v1385_v1  ;;  %v1395_v6 = vld [vmem:[%s1796_s0 + $0x40] sm:$0xff]   ;;  %v1396_v7 = vld [vmem:[%s1796_s0 + $0x48] sm:$0xff]   ;;  %v1390_v9 = vld [vmem:[%s1796_s0 + $0x18] sm:$0xff]  }
   0x6   :  { %1247 = vmatprep.subr.bf16.mxu0 %v1386_v2  ;;  %1249 = vmatprep.mubr.msk.bf16.mxu0 %vm171_vm0, %v1387_v3  ;;  %v1391_v10 = vld [vmem:[%s1796_s0 + $0x20] sm:$0xff]   ;;  %v1398_v11 = vld [vmem:[%s1796_s0 + $0x58] sm:$0xff]   ;;  %v1404_v14 = vld [vmem:[%s1799_s3 + $0x30] sm:$0xff]  }
   0x7   :  { %1378 = vmatprep.subr.bf16.mxu1 %v1386_v2  ;;  %1265 = vmatprep.mubr.msk.bf16.mxu1 %vm171_vm0, %v1395_v6  ;;  %v1399_v12 = vld [vmem:[%s1796_s0 + $0x60] sm:$0xff]   ;;  %v1403_v13 = vld [vmem:[%s1799_s3 + $0x38] sm:$0xff]   ;;  %v1392_v15 = vld [vmem:[%s1796_s0 + $0x28] sm:$0xff]  }
   0x8   :  { %v1393_v16 = vld [vmem:[%s1796_s0 + $0x30] sm:$0xff]   ;;  %v1405_v17 = vld [vmem:[%s1799_s3 + $0x28] sm:$0xff]   ;;  %v1406_v20 = vld [vmem:[%s1799_s3 + $0x20] sm:$0xff]  }
   0x9   :  { %1248 = vmatpush3.bf16.msra.mxu0 %v1386_v2  ;;  %1380 = vmatpush3.bf16.msra.mxu1 %v1386_v2  ;;  %v1400_v18 = vld [vmem:[%s1796_s0 + $0x68] sm:$0xff]   ;;  %v1401_v19 = vld [vmem:[%s1796_s0 + $0x70] sm:$0xff]   ;;  %v1394_v21 = vld [vmem:[%s1796_s0 + $0x38] sm:$0xff]  }
   0xa   :  { %1281 = vmatprep.subr.bf16.mxu1 %v1403_v13 }
   0xc   :  { %1250 = vmatmul.mubr.msk.bf16.vlgmr.msra.gmra.mxu0 %vm171_vm0, %v1388_v4  ;;  %1266 = vmatmul.mubr.msk.bf16.vlgmr.msra.gmra.mxu1 %vm171_vm0, %v1396_v7 }
   0xd   :  { %1253 = vmatprep.mubr.msk.bf16.mxu0 %vm171_vm0, %v1389_v5  ;;  %1269 = vmatprep.mubr.msk.bf16.mxu1 %vm171_vm0, %v1397_v8 }
   0xe   :  { %1282 = vmatpush3.bf16.msra.mxu1 %v1403_v13 }
   0xf   :  { %1283 = vmatprep.subr.bf16.mxu1 %v1404_v14 }
  0x12   :  { %1284 = vmatpush3.bf16.msra.mxu1 %v1404_v14 }
  0x13   :  { %1285 = vmatprep.subr.bf16.mxu1 %v1405_v17 }
  0x14   :  { %1254 = vmatmul.mubr.msk.bf16.gmra.mxu0 %vm171_vm0, %v1390_v9  ;;  %1270 = vmatmul.mubr.msk.bf16.gmra.mxu1 %vm171_vm0, %v1398_v11 }
  0x15   :  { %1257 = vmatprep.mubr.msk.bf16.mxu0 %vm171_vm0, %v1391_v10  ;;  %1273 = vmatprep.mubr.msk.bf16.mxu1 %vm171_vm0, %v1399_v12 }
  0x16   :  { %1286 = vmatpush3.bf16.msra.mxu1 %v1405_v17 }
  0x1c   :  { %1258 = vmatmul.mubr.msk.bf16.gmra.mxu0 %vm171_vm0, %v1392_v15  ;;  %1274 = vmatmul.mubr.msk.bf16.gmra.mxu1 %vm171_vm0, %v1400_v18 }
  0x1d   :  { %1261 = vmatprep.mubr.msk.bf16.mxu0 %vm171_vm0, %v1393_v16  ;;  %1277 = vmatprep.mubr.msk.bf16.mxu1 %vm171_vm0, %v1401_v19 }
  0x1e   :  { %16 = vsyncpa [#allocation4], 0  ;;  %1287 = vmatprep.subr.bf16.mxu1 %v1406_v20  ;;  %v1407_v22 = vld [vmem:[%s1799_s3 + $0x18] sm:$0xff]   ;;  %v1408_v24 = vld [vmem:[%s1799_s3 + $0x10] sm:$0xff]  }
  0x1f   :  { %v1402_v23 = vld [vmem:[%s1796_s0 + $0x78] sm:$0xff]   ;;  %1288 = vmatpush3.bf16.msra.mxu1 %v1406_v20  ;;  %v1409_v25 = vld [vmem:[%s1799_s3 + $0x8] sm:$0xff]   ;;  %v1410_v26 = vld [vmem:[%s1799_s3] sm:$0xff]  }
  0x20   :  { %1289 = vmatprep.subr.bf16.mxu1 %v1407_v22  ;;  %v1411_v27 = vld [vmem:[%s1801_s5 + $0x38] sm:$0xff]   ;;  %v1412_v28 = vld [vmem:[%s1801_s5 + $0x30] sm:$0xff]   ;;  %v1413_v29 = vld [vmem:[%s1801_s5 + $0x28] sm:$0xff]  }
  0x21   :  { %1329 = vmatprep.subr.bf16.mxu0 %v1411_v27  ;;  %v1414_v30 = vld [vmem:[%s1801_s5 + $0x20] sm:$0xff]   ;;  %v1415_v31 = vld [vmem:[%s1801_s5 + $0x18] sm:$0xff]  }
  0x22   :  { %1330 = vmatpush3.bf16.msra.mxu0 %v1411_v27  ;;  %v1609_v34 = vld [vmem:[%s1798_s2] ss:$0 sm:$0xff] }
  0x23   :  { %1290 = vmatpush3.bf16.msra.mxu1 %v1407_v22  ;;  %1331 = vmatprep.subr.bf16.mxu0 %v1412_v28 }
  0x24   :  { %1262 = vmatmul.mubr.msk.bf16.gmra.mxu0 %vm171_vm0, %v1394_v21  ;;  %1278 = vmatmul.mubr.msk.bf16.gmra.mxu1 %vm171_vm0, %v1402_v23 }
  0x25   :  { %1291 = vmatprep.subr.bf16.mxu1 %v1408_v24 }
  0x26   :  { %1332 = vmatpush3.bf16.msra.mxu0 %v1412_v28 }
  0x27   :  { %1292 = vmatpush3.bf16.msra.mxu1 %v1408_v24  ;;  %1333 = vmatprep.subr.bf16.mxu0 %v1413_v29 }
  0x28   :  { %1293 = vmatprep.subr.bf16.mxu1 %v1409_v25 }
  0x2a   :  { %1334 = vmatpush3.bf16.msra.mxu0 %v1413_v29 }
  0x2b   :  { %1294 = vmatpush3.bf16.msra.mxu1 %v1409_v25  ;;  %1335 = vmatprep.subr.bf16.mxu0 %v1414_v30 }
  0x2c   :  { %1295 = vmatprep.subr.bf16.mxu1 %v1410_v26 }
  0x2e   :  { %1336 = vmatpush3.bf16.msra.mxu0 %v1414_v30 }
  0x2f   :  { %1296 = vmatpush3.bf16.msra.mxu1 %v1410_v26  ;;  %1337 = vmatprep.subr.bf16.mxu0 %v1415_v31 }
  0x32   :  { %1338 = vmatpush3.bf16.msra.mxu0 %v1415_v31 }
  0xcc   :  { %v1251_v32 = vpop.f32.mrf.mxu0  ;;  %v1611_v35 = vpop.f32.mrf.mxu1 }
  0xcd   :  { %v263_v40 = vadd.f32 %v1251_v32, %v1609_v34 }
  0xce   :  { %v254_v33 = vpop.f32.mrf.mxu0  ;;  %v318_v39 = vpop.f32.mrf.mxu1 }
  0xcf   :  { %v255_v37 = vadd.f32 %v1609_v34, %v254_v33  ;;  %v383_v49 = vmax.f32 %v263_v40, 0.0  ;;  %v319_v22 = vadd.f32 %v1609_v34, %v318_v39 }
  0xd0   :  { %v1252_v36 = vpop.f32.mrf.mxu0  ;;  %v1617_v43 = vpop.f32.mrf.mxu1 }
  0xd1   :  { %v266_v38 = vadd.f32 %v1252_v36, %v1609_v34  ;;  %v381_v46 = vmax.f32 %v255_v37, 0.0  ;;  %v397_v31 = vmax.f32 %v319_v22, 0.0  ;;  %v1670_v22 = vld [vmem:[%s1800_s4] ss:$0 sm:$0xff] }
  0xd2   :  { %v257_v41 = vpop.f32.mrf.mxu0  ;;  %v321_v48 = vpop.f32.mrf.mxu1 }
  0xd3   :  { %v258_v42 = vadd.f32 %v1609_v34, %v257_v41  ;;  %v384_v44 = vmax.f32 %v266_v38, 0.0  ;;  %v322_v23 = vadd.f32 %v1609_v34, %v321_v48  ;;  %v330_v48 = vadd.f32 %v1617_v43, %v1609_v34 }
  0xd4   :  { %v1255_v45 = vpop.f32.mrf.mxu0  ;;  %v1619_v52 = vpop.f32.mrf.mxu1 }
  0xd5   :  { %v382_v47 = vmax.f32 %v258_v42, 0.0  ;;  %v431_v53 = vpack.c.bf16 %v384_v44, %v383_v49  ;;  %v279_v58 = vadd.f32 %v1255_v45, %v1609_v34  ;;  %v398_v33 = vmax.f32 %v322_v23, 0.0 }
  0xd6   :  { %v270_v50 = vpop.f32.mrf.mxu0  ;;  %v334_v57 = vpop.f32.mrf.mxu1 }
  0xd7   :  { %v430_v51 = vpack.c.bf16 %v382_v47, %v381_v46  ;;  %v271_v55 = vadd.f32 %v1609_v34, %v270_v50  ;;  %v387_v3 = vmax.f32 %v279_v58, 0.0  ;;  %v438_v42 = vpack.c.bf16 %v398_v33, %v397_v31 }
  0xd8   :  { %v1256_v54 = vpop.f32.mrf.mxu0  ;;  %v1625_v61 = vpop.f32.mrf.mxu1  ;;  %v335_v44 = vadd.f32 %v1609_v34, %v334_v57  ;;  %v327_v46 = vadd.f32 %v1611_v35, %v1609_v34  ;;  %v343_v35 = vadd.f32 %v1619_v52, %v1609_v34 }
  0xd9   :  { %v282_v56 = vadd.f32 %v1256_v54, %v1609_v34  ;;  %1297 = vmatprep.mubr.bf16.mxu1 %v430_v51  ;;  %v385_v0 = vmax.f32 %v271_v55, 0.0  ;;  %v400_v54 = vmax.f32 %v330_v48, 0.0  ;;  %v346_v43 = vadd.f32 %v1625_v61, %v1609_v34 }
  0xda   :  { %v273_v59 = vpop.f32.mrf.mxu0  ;;  %1298 = vmatmul.mubr.bf16.vlgmr.msra.gmra.mxu1 %v431_v53  ;;  %v337_v2 = vpop.f32.mrf.mxu1  ;;  %v401_v50 = vmax.f32 %v335_v44, 0.0  ;;  %v399_v53 = vmax.f32 %v327_v46, 0.0 }
  0xdb   :  { %v274_v60 = vadd.f32 %v1609_v34, %v273_v59  ;;  %v388_v62 = vmax.f32 %v282_v56, 0.0  ;;  %v338_v45 = vadd.f32 %v1609_v34, %v337_v2 }
  0xdc   :  { %v1259_v63 = vpop.f32.mrf.mxu0  ;;  %v1627_v8 = vpop.f32.mrf.mxu1  ;;  %v439_v59 = vpack.c.bf16 %v400_v54, %v399_v53 }
  0xdd   :  { %v386_v1 = vmax.f32 %v274_v60, 0.0  ;;  %v433_v6 = vpack.c.bf16 %v388_v62, %v387_v3  ;;  %v295_v11 = vadd.f32 %v1259_v63, %v1609_v34  ;;  %v402_v51 = vmax.f32 %v338_v45, 0.0 }
  0xde   :  { %v286_v4 = vpop.f32.mrf.mxu0  ;;  %v350_v16 = vpop.f32.mrf.mxu1  ;;  %v359_v52 = vadd.f32 %v1627_v8, %v1609_v34  ;;  %v1416_v8 = vld [vmem:[%s1801_s5 + $0x10] sm:$0xff]  }
  0xdf   :  { %v432_v5 = vpack.c.bf16 %v386_v1, %v385_v0  ;;  %v287_v9 = vadd.f32 %v1609_v34, %v286_v4  ;;  %v391_v19 = vmax.f32 %v295_v11, 0.0  ;;  %v440_v56 = vpack.c.bf16 %v402_v51, %v401_v50  ;;  %1339 = vmatprep.subr.bf16.mxu0 %v1416_v8 }
  0xe0   :  { %v1260_v7 = vpop.f32.mrf.mxu0  ;;  %v1276_v26 = vpop.f32.mrf.mxu1  ;;  %v351_v57 = vadd.f32 %v1609_v34, %v350_v16  ;;  %v403_v0 = vmax.f32 %v343_v35, 0.0  ;;  %v404_v1 = vmax.f32 %v346_v43, 0.0  ;;  %1340 = vmatpush3.bf16.msra.mxu0 %v1416_v8 }
  0xe1   :  { %v298_v10 = vadd.f32 %v1260_v7, %v1609_v34  ;;  %1301 = vmatprep.mubr.bf16.mxu1 %v432_v5  ;;  %v389_v17 = vmax.f32 %v287_v9, 0.0  ;;  %v362_v7 = vadd.f32 %v1276_v26, %v1609_v34 }
  0xe2   :  { %v289_v12 = vpop.f32.mrf.mxu0  ;;  %1302 = vmatmul.mubr.bf16.gmra.mxu1 %v433_v6  ;;  %v353_v37 = vpop.f32.mrf.mxu1  ;;  %v405_v62 = vmax.f32 %v351_v57, 0.0  ;;  %v441_v6 = vpack.c.bf16 %v404_v1, %v403_v0 }
  0xe3   :  { %v290_v13 = vadd.f32 %v1609_v34, %v289_v12  ;;  %v392_v14 = vmax.f32 %v298_v10, 0.0  ;;  %v354_v58 = vadd.f32 %v1609_v34, %v353_v37  ;;  %v407_v10 = vmax.f32 %v359_v52, 0.0 }
  0xe4   :  { %v1263_v15 = vpop.f32.mrf.mxu0  ;;  %v1279_v49 = vpop.f32.mrf.mxu1  ;;  %v408_v11 = vmax.f32 %v362_v7, 0.0 }
  0xe5   :  { %v390_v18 = vmax.f32 %v290_v13, 0.0  ;;  %v435_v24 = vpack.c.bf16 %v392_v14, %v391_v19  ;;  %v311_v29 = vadd.f32 %v1263_v15, %v1609_v34  ;;  %v406_v63 = vmax.f32 %v354_v58, 0.0  ;;  %v1417_v19 = vld [vmem:[%s1801_s5 + $0x8] sm:$0xff]  }
  0xe6   :  { %v302_v20 = vpop.f32.mrf.mxu0  ;;  %v366_v55 = vpop.f32.mrf.mxu1  ;;  %v443_v13 = vpack.c.bf16 %v408_v11, %v407_v10  ;;  %v375_v14 = vadd.f32 %v1279_v49, %v1609_v34  ;;  %1341 = vmatprep.subr.bf16.mxu0 %v1417_v19 }
  0xe7   :  { %v434_v21 = vpack.c.bf16 %v390_v18, %v389_v17  ;;  %v303_v27 = vadd.f32 %v1609_v34, %v302_v20  ;;  %v395_v40 = vmax.f32 %v311_v29, 0.0  ;;  %v442_v3 = vpack.c.bf16 %v406_v63, %v405_v62  ;;  %1342 = vmatpush3.bf16.msra.mxu0 %v1417_v19 }
  0xe8   :  { %v1264_v25 = vpop.f32.mrf.mxu0  ;;  %v1280_v60 = vpop.f32.mrf.mxu1  ;;  %v367_v4 = vadd.f32 %v1609_v34, %v366_v55  ;;  %v411_v16 = vmax.f32 %v375_v14, 0.0 }
  0xe9   :  { %v314_v28 = vadd.f32 %v1264_v25, %v1609_v34  ;;  %1305 = vmatprep.mubr.bf16.mxu1 %v434_v21  ;;  %v393_v38 = vmax.f32 %v303_v27, 0.0  ;;  %v378_v15 = vadd.f32 %v1280_v60, %v1609_v34 }
  0xea   :  { %v305_v30 = vpop.f32.mrf.mxu0  ;;  %1306 = vmatmul.mubr.bf16.gmra.mxu1 %v435_v24  ;;  %v369_v2 = vpop.f32.mrf.mxu1  ;;  %v409_v61 = vmax.f32 %v367_v4, 0.0 }
  0xeb   :  { %v306_v32 = vadd.f32 %v1609_v34, %v305_v30  ;;  %v396_v36 = vmax.f32 %v314_v28, 0.0  ;;  %v370_v5 = vadd.f32 %v1609_v34, %v369_v2  ;;  %v412_v17 = vmax.f32 %v378_v15, 0.0  ;;  %v1418_v34 = vld [vmem:[%s1801_s5] sm:$0xff]  }
  0xec   :  { %1343 = vmatprep.subr.bf16.mxu0 %v1418_v34 }
  0xed   :  { %v394_v39 = vmax.f32 %v306_v32, 0.0  ;;  %v437_v47 = vpack.c.bf16 %v396_v36, %v395_v40  ;;  %v410_v9 = vmax.f32 %v370_v5, 0.0  ;;  %v445_v18 = vpack.c.bf16 %v412_v17, %v411_v16  ;;  %1344 = vmatpush3.bf16.msra.mxu0 %v1418_v34 }
  0xef   :  { %v436_v41 = vpack.c.bf16 %v394_v39, %v393_v38  ;;  %v444_v12 = vpack.c.bf16 %v410_v9, %v409_v61 }
  0xf1   :  { %1309 = vmatprep.mubr.bf16.mxu1 %v436_v41 }
  0xf2   :  { %1310 = vmatmul.mubr.bf16.gmra.mxu1 %v437_v47 }
  0xf3   :  { %1313 = vmatprep.mubr.bf16.mxu1 %v438_v42 }
  0xfa   :  { %1314 = vmatmul.mubr.bf16.gmra.mxu1 %v439_v59 }
  0xfb   :  { %1317 = vmatprep.mubr.bf16.mxu1 %v440_v56 }
 0x102   :  { %1318 = vmatmul.mubr.bf16.gmra.mxu1 %v441_v6 }
 0x103   :  { %1321 = vmatprep.mubr.bf16.mxu1 %v442_v3 }
 0x10a   :  { %1322 = vmatmul.mubr.bf16.gmra.mxu1 %v443_v13 }
 0x10b   :  { %1325 = vmatprep.mubr.bf16.mxu1 %v444_v12 }
 0x112   :  { %1326 = vmatmul.mubr.bf16.gmra.mxu1 %v445_v18 }
 0x19a   :  { %v1299_v20 = vpop.f32.mrf.mxu1 }
 0x19b   :  { %v543_v26 = vadd.f32 %v1299_v20, %v1670_v22 }
 0x19c   :  { %v534_v21 = vpop.f32.mrf.mxu1 }
 0x19d   :  { %v535_v24 = vadd.f32 %v1670_v22, %v534_v21  ;;  %v663_v33 = vmax.f32 %v543_v26, 0.0 }
 0x19e   :  { %v1300_v23 = vpop.f32.mrf.mxu1 }
 0x19f   :  { %v546_v25 = vadd.f32 %v1300_v23, %v1670_v22  ;;  %v661_v31 = vmax.f32 %v535_v24, 0.0 }
 0x1a0   :  { %v537_v27 = vpop.f32.mrf.mxu1 }
 0x1a1   :  { %v538_v28 = vadd.f32 %v1670_v22, %v537_v27  ;;  %v664_v29 = vmax.f32 %v546_v25, 0.0 }
 0x1a2   :  { %v1303_v30 = vpop.f32.mrf.mxu1 }
 0x1a3   :  { %v662_v32 = vmax.f32 %v538_v28, 0.0  ;;  %v711_v38 = vpack.c.bf16 %v664_v29, %v663_v33  ;;  %v559_v42 = vadd.f32 %v1303_v30, %v1670_v22 }
 0x1a4   :  { %v550_v36 = vpop.f32.mrf.mxu1 }
 0x1a5   :  { %v710_v37 = vpack.c.bf16 %v662_v32, %v661_v31  ;;  %v551_v40 = vadd.f32 %v1670_v22, %v550_v36  ;;  %v667_v50 = vmax.f32 %v559_v42, 0.0 }
 0x1a6   :  { %v1304_v39 = vpop.f32.mrf.mxu1 }
 0x1a7   :  { %v562_v41 = vadd.f32 %v1304_v39, %v1670_v22  ;;  %1345 = vmatprep.mubr.bf16.mxu0 %v710_v37  ;;  %v665_v48 = vmax.f32 %v551_v40, 0.0 }
 0x1a8   :  { %v553_v44 = vpop.f32.mrf.mxu1  ;;  %1346 = vmatmul.mubr.bf16.vlgmr.msra.gmra.mxu0 %v711_v38 }
 0x1a9   :  { %v554_v45 = vadd.f32 %v1670_v22, %v553_v44  ;;  %v668_v46 = vmax.f32 %v562_v41, 0.0 }
 0x1aa   :  { %v1307_v47 = vpop.f32.mrf.mxu1 }
 0x1ab   :  { %v666_v49 = vmax.f32 %v554_v45, 0.0  ;;  %v713_v54 = vpack.c.bf16 %v668_v46, %v667_v50  ;;  %v575_v58 = vadd.f32 %v1307_v47, %v1670_v22 }
 0x1ac   :  { %v566_v51 = vpop.f32.mrf.mxu1 }
 0x1ad   :  { %v712_v53 = vpack.c.bf16 %v666_v49, %v665_v48  ;;  %v567_v56 = vadd.f32 %v1670_v22, %v566_v51  ;;  %v671_v0 = vmax.f32 %v575_v58, 0.0 }
 0x1ae   :  { %v1308_v55 = vpop.f32.mrf.mxu1 }
 0x1af   :  { %v578_v57 = vadd.f32 %v1308_v55, %v1670_v22  ;;  %1349 = vmatprep.mubr.bf16.mxu0 %v712_v53  ;;  %v669_v62 = vmax.f32 %v567_v56, 0.0 }
 0x1b0   :  { %v569_v59 = vpop.f32.mrf.mxu1  ;;  %1350 = vmatmul.mubr.bf16.gmra.mxu0 %v713_v54 }
 0x1b1   :  { %v570_v35 = vadd.f32 %v1670_v22, %v569_v59  ;;  %v672_v43 = vmax.f32 %v578_v57, 0.0 }
 0x1b2   :  { %v1311_v60 = vpop.f32.mrf.mxu1 }
 0x1b3   :  { %v670_v63 = vmax.f32 %v570_v35, 0.0  ;;  %v715_v3 = vpack.c.bf16 %v672_v43, %v671_v0  ;;  %v591_v52 = vadd.f32 %v1311_v60, %v1670_v22 }
 0x1b4   :  { %v582_v1 = vpop.f32.mrf.mxu1 }
 0x1b5   :  { %v714_v2 = vpack.c.bf16 %v670_v63, %v669_v62  ;;  %v583_v5 = vadd.f32 %v1670_v22, %v582_v1  ;;  %v675_v13 = vmax.f32 %v591_v52, 0.0 }
 0x1b6   :  { %v1312_v4 = vpop.f32.mrf.mxu1 }
 0x1b7   :  { %v594_v6 = vadd.f32 %v1312_v4, %v1670_v22  ;;  %1353 = vmatprep.mubr.bf16.mxu0 %v714_v2  ;;  %v673_v11 = vmax.f32 %v583_v5, 0.0 }
 0x1b8   :  { %v585_v7 = vpop.f32.mrf.mxu1  ;;  %1354 = vmatmul.mubr.bf16.gmra.mxu0 %v715_v3 }
 0x1b9   :  { %v586_v61 = vadd.f32 %v1670_v22, %v585_v7  ;;  %v676_v9 = vmax.f32 %v594_v6, 0.0 }
 0x1ba   :  { %v1315_v10 = vpop.f32.mrf.mxu1 }
 0x1bb   :  { %v674_v12 = vmax.f32 %v586_v61, 0.0  ;;  %v717_v16 = vpack.c.bf16 %v676_v9, %v675_v13  ;;  %v607_v19 = vadd.f32 %v1315_v10, %v1670_v22  ;;  %v1707_v61 = vld [vmem:[%s1803_s7] sm:$0x1] }
 0x1bc   :  { %v598_v14 = vpop.f32.mrf.mxu1  ;;  %1243 = vmatprep.mubr.f32.mxu1 %v1707_v61  ;;  %v974_v10 = vld [vmem:[#allocation2] sm:$0x1] }
 0x1bd   :  { %v716_v15 = vpack.c.bf16 %v674_v12, %v673_v11  ;;  %v599_v18 = vadd.f32 %v1670_v22, %v598_v14  ;;  %v679_v26 = vmax.f32 %v607_v19, 0.0 }
 0x1be   :  { %v1316_v17 = vpop.f32.mrf.mxu1 }
 0x1bf   :  { %v610_v8 = vadd.f32 %v1316_v17, %v1670_v22  ;;  %1357 = vmatprep.mubr.bf16.mxu0 %v716_v15  ;;  %v677_v24 = vmax.f32 %v599_v18, 0.0 }
 0x1c0   :  { %v601_v34 = vpop.f32.mrf.mxu1  ;;  %1358 = vmatmul.mubr.bf16.gmra.mxu0 %v717_v16 }
 0x1c1   :  { %v602_v20 = vadd.f32 %v1670_v22, %v601_v34  ;;  %v680_v21 = vmax.f32 %v610_v8, 0.0 }
 0x1c2   :  { %v1319_v23 = vpop.f32.mrf.mxu1 }
 0x1c3   :  { %v678_v25 = vmax.f32 %v602_v20, 0.0  ;;  %v719_v29 = vpack.c.bf16 %v680_v21, %v679_v26  ;;  %v623_v33 = vadd.f32 %v1319_v23, %v1670_v22 }
 0x1c4   :  { %v614_v27 = vpop.f32.mrf.mxu1 }
 0x1c5   :  { %v718_v28 = vpack.c.bf16 %v678_v25, %v677_v24  ;;  %v615_v31 = vadd.f32 %v1670_v22, %v614_v27  ;;  %v683_v42 = vmax.f32 %v623_v33, 0.0 }
 0x1c6   :  { %v1320_v30 = vpop.f32.mrf.mxu1 }
 0x1c7   :  { %v626_v32 = vadd.f32 %v1320_v30, %v1670_v22  ;;  %1361 = vmatprep.mubr.bf16.mxu0 %v718_v28  ;;  %v681_v40 = vmax.f32 %v615_v31, 0.0 }
 0x1c8   :  { %v617_v36 = vpop.f32.mrf.mxu1  ;;  %1362 = vmatmul.mubr.bf16.gmra.mxu0 %v719_v29 }
 0x1c9   :  { %v618_v37 = vadd.f32 %v1670_v22, %v617_v36  ;;  %v684_v38 = vmax.f32 %v626_v32, 0.0 }
 0x1ca   :  { %v1323_v39 = vpop.f32.mrf.mxu1 }
 0x1cb   :  { %v682_v41 = vmax.f32 %v618_v37, 0.0  ;;  %v721_v46 = vpack.c.bf16 %v684_v38, %v683_v42  ;;  %v639_v50 = vadd.f32 %v1323_v39, %v1670_v22 }
 0x1cc   :  { %v630_v44 = vpop.f32.mrf.mxu1 }
 0x1cd   :  { %v720_v45 = vpack.c.bf16 %v682_v41, %v681_v40  ;;  %v631_v48 = vadd.f32 %v1670_v22, %v630_v44  ;;  %v687_v58 = vmax.f32 %v639_v50, 0.0  ;;  %v1743_v41 = vld [vmem:[%s1802_s6] ss:$0 sm:$0xff]  ;;  %s1443_s6 = smov [#allocation3]  }
 0x1ce   :  { %v1324_v47 = vpop.f32.mrf.mxu1  ;;  %s1084_s12 = sshll.u32 %s1443_s6, 4  ;;  %s1085_s12 = int_to_ptr.vmem [resolvable:$true] %s1084_s12 }
 0x1cf   :  { %v642_v49 = vadd.f32 %v1324_v47, %v1670_v22  ;;  %1365 = vmatprep.mubr.bf16.mxu0 %v720_v45  ;;  %v685_v56 = vmax.f32 %v631_v48, 0.0  ;;  %s1419_s13 = scalar_lea.vmem %s1085_s12, 32  ;;  %p1424_p1 = scmp.lt.s32.totalorder %s1085_s12, %s1085_s12 }
 0x1d0   :  { %v633_v51 = vpop.f32.mrf.mxu1  ;;  %1366 = vmatmul.mubr.bf16.gmra.mxu0 %v721_v46  ;;  %p1420_p0 = scmp.ne.s32.totalorder %s1085_s12, %s1419_s13  ;;  %p1425_p2 = scmp.lt.s32.totalorder %s1419_s13, %s1419_s13 }
 0x1d1   :  { %v634_v53 = vadd.f32 %v1670_v22, %v633_v51  ;;  %v688_v54 = vmax.f32 %v642_v49, 0.0 }
 0x1d2   :  { %v1327_v55 = vpop.f32.mrf.mxu1  ;;  %p1426_p3 = por %p1425_p2, %p1424_p1 }
 0x1d3   :  { %v686_v57 = vmax.f32 %v634_v53, 0.0  ;;  %v723_v43 = vpack.c.bf16 %v688_v54, %v687_v58  ;;  %v655_v0 = vadd.f32 %v1327_v55, %v1670_v22 }
 0x1d4   :  { %v646_v59 = vpop.f32.mrf.mxu1  ;;  %p1427_p4 = pnand %p1426_p3, %p1420_p0 }
 0x1d5   :  { %v722_v35 = vpack.c.bf16 %v686_v57, %v685_v56  ;;  %v647_v62 = vadd.f32 %v1670_v22, %v646_v59  ;;  %v691_v6 = vmax.f32 %v655_v0, 0.0 }
 0x1d6   :  { %v1328_v60 = vpop.f32.mrf.mxu1 }
 0x1d7   :  { %v658_v63 = vadd.f32 %v1328_v60, %v1670_v22  ;;  %1369 = vmatprep.mubr.bf16.mxu0 %v722_v35  ;;  %v689_v4 = vmax.f32 %v647_v62, 0.0 }
 0x1d8   :  { %v649_v1 = vpop.f32.mrf.mxu1  ;;  %1370 = vmatmul.mubr.bf16.gmra.mxu0 %v723_v43 }
 0x1d9   :  { %v650_v2 = vadd.f32 %v1670_v22, %v649_v1  ;;  %v692_v3 = vmax.f32 %v658_v63, 0.0  ;;  %v1441_v22 = vmov 0  }
 0x1da   :  { %1384 = vset.pattern.permute.xlu0 %v1441_v22 }
 0x1db   :  { %v690_v5 = vmax.f32 %v650_v2, 0.0  ;;  %v725_v7 = vpack.c.bf16 %v692_v3, %v691_v6  ;;  %977 = vperm.xlu0 %1384, %v974_v10  }
 0x1dd   :  { %v724_v52 = vpack.c.bf16 %v690_v5, %v689_v4 }
 0x1df   :  { %1373 = vmatprep.mubr.bf16.mxu0 %v724_v52 }
 0x1e0   :  { %1374 = vmatmul.mubr.bf16.gmra.mxu0 %v725_v7 }
 0x268   :  { %v1710_v9 = vpop.f32.mrf.mxu0 }
 0x26a   :  { %v1712_v11 = vpop.f32.mrf.mxu0 }
 0x26c   :  { %v1714_v12 = vpop.f32.mrf.mxu0 }
 0x26e   :  { %v1716_v13 = vpop.f32.mrf.mxu0 }
 0x270   :  { %v1718_v14 = vpop.f32.mrf.mxu0 }
 0x272   :  { %v1720_v15 = vpop.f32.mrf.mxu0 }
 0x274   :  { %v1722_v16 = vpop.f32.mrf.mxu0 }
 0x276   :  { %v1724_v17 = vpop.f32.mrf.mxu0 }
 0x278   :  { %v1355_v18 = vpop.f32.mrf.mxu0 }
 0x279   :  { %v855_v1 = vadd.f32 %v1355_v18, %v1743_v41 }
 0x27a   :  { %v1726_v8 = vpop.f32.mrf.mxu0 }
 0x27b   :  { %v951_v5 = vmax.f32 %v855_v1, 0.0  ;;  %v847_v10 = vadd.f32 %v1743_v41, %v1726_v8 }
 0x27c   :  { %v1356_v19 = vpop.f32.mrf.mxu0 }
 0x27d   :  { %v858_v60 = vadd.f32 %v1356_v19, %v1743_v41 }
 0x27e   :  { %v849_v34 = vpop.f32.mrf.mxu0 }
 0x27f   :  { %v952_v2 = vmax.f32 %v858_v60, 0.0  ;;  %v850_v6 = vadd.f32 %v1743_v41, %v849_v34 }
 0x280   :  { %v1359_v20 = vpop.f32.mrf.mxu0 }
 0x281   :  { %v871_v49 = vadd.f32 %v1359_v20, %v1743_v41  ;;  %v950_v22 = vmax.f32 %v850_v6, 0.0  ;;  %v842_v20 = vadd.f32 %v1722_v16, %v1743_v41  ;;  %v834_v16 = vadd.f32 %v1743_v41, %v1724_v17 }
 0x282   :  { %v862_v21 = vpop.f32.mrf.mxu0 }
 0x283   :  { %v955_v54 = vmax.f32 %v871_v49, 0.0  ;;  %v863_v58 = vadd.f32 %v1743_v41, %v862_v21  ;;  %v949_v21 = vmax.f32 %v847_v10, 0.0 }
 0x284   :  { %v1360_v23 = vpop.f32.mrf.mxu0 }
 0x285   :  { %v874_v42 = vadd.f32 %v1360_v23, %v1743_v41  ;;  %v953_v62 = vmax.f32 %v863_v58, 0.0 }
 0x286   :  { %v865_v24 = vpop.f32.mrf.mxu0 }
 0x287   :  { %v956_v50 = vmax.f32 %v874_v42, 0.0  ;;  %v866_v55 = vadd.f32 %v1743_v41, %v865_v24  ;;  %v839_v24 = vadd.f32 %v1718_v14, %v1743_v41  ;;  %v831_v14 = vadd.f32 %v1743_v41, %v1720_v15 }
 0x288   :  { %v1728_v25 = vpop.f32.mrf.mxu0  ;;  %v823_v15 = vadd.f32 %v1710_v9, %v1743_v41  ;;  %v815_v9 = vadd.f32 %v1743_v41, %v1712_v11 }
 0x289   :  { %v954_v59 = vmax.f32 %v866_v55, 0.0  ;;  %v945_v17 = vmax.f32 %v831_v14, 0.0 }
 0x28a   :  { %v1730_v26 = vpop.f32.mrf.mxu0 }
 0x28c   :  { %v1732_v27 = vpop.f32.mrf.mxu0 }
 0x28e   :  { %v1734_v28 = vpop.f32.mrf.mxu0 }
 0x290   :  { %v1367_v29 = vpop.f32.mrf.mxu0 }
 0x291   :  { %v903_v34 = vadd.f32 %v1367_v29, %v1743_v41 }
 0x292   :  { %v1736_v30 = vpop.f32.mrf.mxu0 }
 0x293   :  { %v963_v8 = vmax.f32 %v903_v34, 0.0  ;;  %v895_v29 = vadd.f32 %v1743_v41, %v1736_v30  ;;  %v887_v30 = vadd.f32 %v1728_v25, %v1743_v41  ;;  %v879_v25 = vadd.f32 %v1743_v41, %v1730_v26  ;;  %v978_v26 = vpop.permute.xlu0 %977 }
 0x294   :  { %v1368_v31 = vpop.f32.mrf.mxu0 }
 0x295   :  { %v906_v18 = vadd.f32 %v1368_v31, %v1743_v41  ;;  %v957_v49 = vmax.f32 %v879_v25, 0.0 }
 0x296   :  { %v1738_v32 = vpop.f32.mrf.mxu0 }
 0x297   :  { %v964_v23 = vmax.f32 %v906_v18, 0.0  ;;  %v898_v31 = vadd.f32 %v1743_v41, %v1738_v32  ;;  %v961_v32 = vmax.f32 %v895_v29, 0.0 }
 0x298   :  { %v1371_v33 = vpop.f32.mrf.mxu0 }
 0x299   :  { %v919_v63 = vadd.f32 %v1371_v33, %v1743_v41  ;;  %v948_v33 = vmax.f32 %v842_v20, 0.0 }
 0x29a   :  { %v910_v36 = vpop.f32.mrf.mxu0 }
 0x29b   :  { %v967_v3 = vmax.f32 %v919_v63, 0.0  ;;  %v911_v52 = vadd.f32 %v1743_v41, %v910_v36  ;;  %v947_v36 = vmax.f32 %v839_v24, 0.0 }
 0x29c   :  { %v1372_v37 = vpop.f32.mrf.mxu0 }
 0x29d   :  { %v922_v35 = vadd.f32 %v1372_v37, %v1743_v41  ;;  %v965_v19 = vmax.f32 %v911_v52, 0.0  ;;  %v962_v37 = vmax.f32 %v898_v31, 0.0 }
 0x29e   :  { %v913_v38 = vpop.f32.mrf.mxu0 }
 0x29f   :  { %v968_v0 = vmax.f32 %v922_v35, 0.0  ;;  %v914_v4 = vadd.f32 %v1743_v41, %v913_v38  ;;  %v946_v38 = vmax.f32 %v834_v16, 0.0 }
 0x2a0   :  { %v1375_v39 = vpop.f32.mrf.mxu0 }
 0x2a1   :  { %v935_v45 = vadd.f32 %v1375_v39, %v1743_v41  ;;  %v966_v7 = vmax.f32 %v914_v4, 0.0  ;;  %v890_v39 = vadd.f32 %v1732_v27, %v1743_v41  ;;  %v882_v27 = vadd.f32 %v1743_v41, %v1734_v28 }
 0x2a2   :  { %v926_v40 = vpop.f32.mrf.mxu0  ;;  %v941_v28 = vmax.f32 %v815_v9, 0.0 }
 0x2a3   :  { %v971_v51 = vmax.f32 %v935_v45, 0.0  ;;  %v927_v56 = vadd.f32 %v1743_v41, %v926_v40  ;;  %v826_v40 = vadd.f32 %v1714_v12, %v1743_v41  ;;  %v960_v42 = vmax.f32 %v890_v39, 0.0 }
 0x2a4   :  { %v1376_v44 = vpop.f32.mrf.mxu0  ;;  %v959_v45 = vmax.f32 %v887_v30, 0.0  ;;  %v818_v12 = vadd.f32 %v1743_v41, %v1716_v13 }
 0x2a5   :  { %v938_v46 = vadd.f32 %v1376_v44, %v1743_v41  ;;  %v969_v43 = vmax.f32 %v927_v56, 0.0  ;;  %v944_v44 = vmax.f32 %v826_v40, 0.0 }
 0x2a6   :  { %v929_v47 = vpop.f32.mrf.mxu0 }
 0x2a7   :  { %v972_v48 = vmax.f32 %v938_v46, 0.0  ;;  %v930_v53 = vadd.f32 %v1743_v41, %v929_v47  ;;  %v943_v46 = vmax.f32 %v823_v15, 0.0  ;;  %v958_v47 = vmax.f32 %v882_v27, 0.0 }
 0x2a9   :  { %1211 = vmatprep.subr.mxu1 %v972_v48  ;;  %v970_v57 = vmax.f32 %v930_v53, 0.0  ;;  %v942_v48 = vmax.f32 %v818_v12, 0.0  ;;  %v1442_v53 = vmov 1966171168  }
 0x2aa   :  { %1212 = vmatpush3.xpose.msra.mxu1 %v956_v50  ;;  %v980_v50 = vlaneseq }
 0x2ab   :  { %1213 = vmatprep.subr.mxu1 %v971_v51 }
 0x2ac   :  { %v981_v51 = vshrl.u32 %v980_v50, 7  ;;  %vm1075_vm1 = vcmp.lt.s32.totalorder %v980_v50, 256 }
 0x2ae   :  { %1214 = vmatpush3.xpose.msra.mxu1 %v955_v54  ;;  %v982_v13 = vsub.s32 0, %v981_v51  ;;  %v1059_v54 = vunpack.c.l.s4 %v1442_v53 }
 0x2af   :  { %1215 = vmatprep.subr.mxu1 %v970_v57 }
 0x2b0   :  { %v983_v55 = vrot.slane %v978_v26, %v982_v13  ;;  %v1060_v56 = vunpack.c.0.s8 %v1059_v54 }
 0x2b2   :  { %1216 = vmatpush3.xpose.msra.mxu1 %v954_v59  ;;  %v1063_v41 = vsub.s32 %v1060_v56, %v981_v51 }
 0x2b3   :  { %1217 = vmatprep.subr.mxu1 %v969_v43 }
 0x2b6   :  { %1218 = vmatpush3.xpose.msra.mxu1 %v953_v62 }
 0x2b7   :  { %1219 = vmatprep.subr.mxu1 %v968_v0 }
 0x2ba   :  { %1220 = vmatpush3.xpose.msra.mxu1 %v952_v2 }
 0x2bb   :  { %1221 = vmatprep.subr.mxu1 %v967_v3 }
 0x2be   :  { %1222 = vmatpush3.xpose.msra.mxu1 %v951_v5 }
 0x2bf   :  { %1223 = vmatprep.subr.mxu1 %v966_v7 }
 0x2c2   :  { %1224 = vmatpush3.xpose.msra.mxu1 %v950_v22 }
 0x2c3   :  { %1225 = vmatprep.subr.mxu1 %v965_v19 }
 0x2c6   :  { %1226 = vmatpush3.xpose.msra.mxu1 %v949_v21 }
 0x2c7   :  { %1227 = vmatprep.subr.mxu1 %v964_v23 }
 0x2ca   :  { %1228 = vmatpush3.xpose.msra.mxu1 %v948_v33 }
 0x2cb   :  { %1229 = vmatprep.subr.mxu1 %v963_v8 }
 0x2ce   :  { %1230 = vmatpush3.xpose.msra.mxu1 %v947_v36 }
 0x2cf   :  { %1231 = vmatprep.subr.mxu1 %v962_v37 }
 0x2d2   :  { %1232 = vmatpush3.xpose.msra.mxu1 %v946_v38 }
 0x2d3   :  { %1233 = vmatprep.subr.mxu1 %v961_v32 }
 0x2d6   :  { %1234 = vmatpush3.xpose.msra.mxu1 %v945_v17 }
 0x2d7   :  { %1235 = vmatprep.subr.mxu1 %v960_v42 }
 0x2da   :  { %1236 = vmatpush3.xpose.msra.mxu1 %v944_v44 }
 0x2db   :  { %1237 = vmatprep.subr.mxu1 %v959_v45 }
 0x2de   :  { %1238 = vmatpush3.xpose.msra.mxu1 %v943_v46 }
 0x2df   :  { %1239 = vmatprep.subr.mxu1 %v958_v47 }
 0x2e2   :  { %1240 = vmatpush3.xpose.msra.mxu1 %v942_v48 }
 0x2e3   :  { %1241 = vmatprep.subr.mxu1 %v957_v49 }
 0x2e6   :  { %1242 = vmatpush3.xpose.msra.mxu1 %v941_v28 }
 0x2e9   :  { %1244 = vmatmul.mubr.f32.vlgmr.msra.gmra.mxu1 %v1707_v61 }
 0x3a9   :  { %v1050_v57 = vpop.f32.mrf.mxu1 }
 0x3aa   :  { %v1051_v59 = vadd.f32 %v1050_v57, %v983_v55 }
 0x3ab   :  { %v1052_v58 = vpop.f32.mrf.mxu1 }
 0x3ac   :  { %v1053_v11 = vadd.f32 %v1052_v58, %v983_v55 }
 0x3ae   :  { %v1057_v35 = vcombine.low %v1051_v59, %v1053_v11 }
 0x3b0   :  { %v1064_v43 = vrot.slane %v1057_v35, %v1063_v41 }
 0x3b2   :  { %v1071_v60 = vrot.slane %v1064_v43, %v1063_v41 }
 0x3b4   :  { %1077 = vst.msk [vmem:[#allocation3] sm:$0x3] %vm1075_vm1, %v1071_v60 }
 0x3b5   :  { %1430 = shalt.err (!%p1427_p4)
}
 0x3b6   :  { %1087 = dma.vmem_to_hbm [thread:$0]  %s1085_s12, 32, %s1805_s9, [#allocation4]  }
 0x3b7   :  { %1439 = dma.done.wait [#allocation4], 32  }
 0x3b8   :  { %1440 = vsyncadd [#allocation4], 4294967264 }
 0x3b9   :  { %1091 = vsyncpa [#allocation4], 1 }

</bundles_post_ra>
